<compile_context>
chip_gen: v7x
topology: tpu7x:2x2x1
jax: 0.10.0
libtpu: 0.0.40
codegen_flags: <defaults>
</compile_context>

<pallas_src>
import jax
import jax.numpy as jnp
from jax.experimental import pallas as pl
from jax.experimental.pallas import tpu as pltpu

INPUT_SIZE = 16
HIDDEN_SIZE = 32
NUM_CLASSES = 2
BATCH = 2
SEQ = 8

G = 4 * HIDDEN_SIZE          # 128 gate lanes (== lane width, nice)

# ---- Static row offsets inside the packed parameter slab (8-aligned). -------
R_WIH = 0                                    # (D, 4H)    rows [0, 16)
R_WHH = 16                                   # (H, 4H)    rows [16, 48)
R_BL = 48                                    # (1, 4H)    row  48
R_W1 = 56                                    # (H, H)     rows [56, 88)   cols [0, H)
R_B1 = 88                                    # (1, H)     row  88         cols [0, H)
R_W2 = 96                                    # (H, C)     rows [96, 128)  cols [0, C)
R_B2 = 128                                   # (1, C)     row  128        cols [0, C)
SLAB_ROWS = 136                              # padded to a multiple of 8


# --------------------------- Fused RNN kernel --------------------------------
def rnn_kernel(x_ref, slab_ref, cls_ref, out_ref):
    # x_ref:   (T*B, D)  time-major input
    # slab_ref:(SLAB_ROWS, 4H) packed parameters
    # cls_ref: (B, C)    classifier output
    # out_ref: (T, B, H) time-major per-step hidden states
    T, B, H = out_ref.shape
    D = x_ref.shape[1]
    C = cls_ref.shape[1]

    # ---- Unpack params from the slab (static sublane-offset views).
    wih = slab_ref[R_WIH:R_WIH + D, :]                 # (D, 4H)
    whh = slab_ref[R_WHH:R_WHH + H, :]                 # (H, 4H), read once
    b_l = slab_ref[R_BL:R_BL + 1, :]                   # (1, 4H)

    # ---- Hoisted, time-parallel input projection: one MXU call for all T.
    xg = jnp.dot(x_ref[...], wih,
                 preferred_element_type=jnp.float32) + b_l     # (T*B, 4H)

    h = jnp.zeros((B, H), jnp.float32)
    c = jnp.zeros((B, H), jnp.float32)

    # ---- Sequential recurrence, fully unrolled (T static & small).
    for t in range(T):
        gates = xg[t * B:(t + 1) * B, :]               # contiguous sublane view
        if t > 0:                                      # h == 0 at t == 0
            gates = gates + jnp.dot(h, whh, preferred_element_type=jnp.float32)

        # Full-vreg transcendentals (EUP), then gate slices (PyTorch i,f,g,o).
        sig = jax.nn.sigmoid(gates)
        tah = jnp.tanh(gates)
        i_g = sig[:, 0 * H:1 * H]
        f_g = sig[:, 1 * H:2 * H]
        g_g = tah[:, 2 * H:3 * H]
        o_g = sig[:, 3 * H:4 * H]

        c = f_g * c + i_g * g_g
        h = o_g * jnp.tanh(c)
        # Time-major: one contiguous masked VMEM store per step; the single
        # HBM writeback of `out` happens once at kernel end.
        out_ref[t, :, :] = h.astype(out_ref.dtype)

    # ---- Fused FC head on the final hidden state: fc1 -> relu -> fc2.
    w1 = slab_ref[R_W1:R_W1 + H, 0:H]                  # (H, H)
    b1 = slab_ref[R_B1:R_B1 + 1, 0:H]                  # (1, H)
    w2 = slab_ref[R_W2:R_W2 + H, 0:C]                  # (H, C)
    b2 = slab_ref[R_B2:R_B2 + 1, 0:C]                  # (1, C)

    z = jnp.dot(h, w1, preferred_element_type=jnp.float32) + b1
    z = jnp.maximum(z, 0.0)
    cls = jnp.dot(z, w2, preferred_element_type=jnp.float32) + b2
    cls_ref[...] = cls.astype(cls_ref.dtype)


# ------------------------------ Wrapper ---------------------------------------
@jax.jit
def rnn_forward(x, slab):
    """x: (B, T, D) f32, slab: packed params. Returns (classes (B,C), out (B,T,H))."""
    B, T, D = x.shape
    H = HIDDEN_SIZE
    C = NUM_CLASSES

    # Time-major slab for the kernel: rows for step t are t*B:(t+1)*B.
    x_tm = jnp.transpose(x, (1, 0, 2)).reshape(T * B, D)

    vmem = pl.BlockSpec(memory_space=pltpu.MemorySpace.VMEM)   # whole array in VMEM
    cost = pl.CostEstimate(
        flops=2 * (T * B * D * G + (T - 1) * B * H * G + B * H * H + B * H * C),
        transcendentals=T * (2 * B * G + B * H),
        bytes_accessed=4 * (T * B * D + SLAB_ROWS * G + T * B * H + B * C),
    )

    classes, out_tm = pl.pallas_call(
        rnn_kernel,
        out_shape=(jax.ShapeDtypeStruct((B, C), jnp.float32),
                   jax.ShapeDtypeStruct((T, B, H), jnp.float32)),
        in_specs=[vmem, vmem],
        out_specs=(vmem, vmem),
        cost_estimate=cost,
    )(x_tm, slab)

    out = jnp.transpose(out_tm, (1, 0, 2))                     # back to (B, T, H)
    return classes, out


# ---------------------------- Pure-JAX reference ------------------------------
def rnn_reference(x, params):
    B, T, D = x.shape
    H = HIDDEN_SIZE

    def step(carry, x_t):
        h, c = carry
        gates = x_t @ params["w_ih_t"] + h @ params["w_hh_t"] + params["b_lstm"]
        i = jax.nn.sigmoid(gates[:, 0 * H:1 * H])
        f = jax.nn.sigmoid(gates[:, 1 * H:2 * H])
        g = jnp.tanh(gates[:, 2 * H:3 * H])
        o = jax.nn.sigmoid(gates[:, 3 * H:4 * H])
        c = f * c + i * g
        h = o * jnp.tanh(c)
        return (h, c), h

    h0 = jnp.zeros((B, H), jnp.float32)
    c0 = jnp.zeros((B, H), jnp.float32)
    _, hs = jax.lax.scan(step, (h0, c0), jnp.transpose(x, (1, 0, 2)))
    out = jnp.transpose(hs, (1, 0, 2))
    last = out[:, -1, :]
    z = jnp.maximum(last @ params["w1_t"] + params["b1"], 0.0)
    classes = z @ params["w2_t"] + params["b2"]
    return classes, out


# ------------------------------ Param init / packing --------------------------
def init_params(key):
    D, H, C = INPUT_SIZE, HIDDEN_SIZE, NUM_CLASSES
    k = 1.0 / jnp.sqrt(H)
    keys = jax.random.split(key, 8)

    def u(kk, shape):
        return jax.random.uniform(kk, shape, jnp.float32, -k, k)

    # LSTM weights (PyTorch layout W_ih: (4H, D), W_hh: (4H, H)); store transposed.
    w_ih = u(keys[0], (4 * H, D))
    w_hh = u(keys[1], (4 * H, H))
    b_ih = u(keys[2], (4 * H,))
    b_hh = u(keys[3], (4 * H,))
    # FC layers (PyTorch Linear weight: (out, in)); store transposed.
    w1 = u(keys[4], (H, H))
    b1 = u(keys[5], (H,))
    w2 = u(keys[6], (C, H))
    b2 = u(keys[7], (C,))

    return {
        "w_ih_t": w_ih.T,                       # (D, 4H)
        "w_hh_t": w_hh.T,                       # (H, 4H)
        "b_lstm": (b_ih + b_hh)[None, :],       # (1, 4H)
        "w1_t": w1.T,                           # (H, H)
        "b1": b1[None, :],                      # (1, H)
        "w2_t": w2.T,                           # (H, C)
        "b2": b2[None, :],                      # (1, C)
    }


def pack_params(params):
    """Pack all weights/biases into one (SLAB_ROWS, 4H) f32 slab (done once)."""
    D, H, C = INPUT_SIZE, HIDDEN_SIZE, NUM_CLASSES
    slab = jnp.zeros((SLAB_ROWS, G), jnp.float32)
    slab = slab.at[R_WIH:R_WIH + D, :].set(params["w_ih_t"])
    slab = slab.at[R_WHH:R_WHH + H, :].set(params["w_hh_t"])
    slab = slab.at[R_BL:R_BL + 1, :].set(params["b_lstm"])
    slab = slab.at[R_W1:R_W1 + H, 0:H].set(params["w1_t"])
    slab = slab.at[R_B1:R_B1 + 1, 0:H].set(params["b1"])
    slab = slab.at[R_W2:R_W2 + H, 0:C].set(params["w2_t"])
    slab = slab.at[R_B2:R_B2 + 1, 0:C].set(params["b2"])
    return slab


if __name__ == "__main__":
    key = jax.random.PRNGKey(0)
    kx, kp = jax.random.split(key)
    x = jax.random.normal(kx, (BATCH, SEQ, INPUT_SIZE), jnp.float32)
    params = init_params(kp)
    slab = pack_params(params)           # packed once, reused every call

    classes, out = rnn_forward(x, slab)
    jax.block_until_ready((classes, out))

    ref_classes, ref_out = rnn_reference(x, params)
    assert classes.shape == (BATCH, NUM_CLASSES)
    assert out.shape == (BATCH, SEQ, HIDDEN_SIZE)
    # All-f32 path: tight tolerance (leaves headroom only for MXU multi-pass
    # matmul rounding and EUP transcendental approximation differences).
    assert jnp.allclose(out, ref_out, rtol=1e-3, atol=1e-3)
    assert jnp.allclose(classes, ref_classes, rtol=1e-3, atol=1e-3)

    print("KERNEL_OK")
</pallas_src>

<mosaic_0001>
module attributes {stable_mosaic.version = 11 : i64} {
  func.func @rnn_kernel(%arg0: memref<16x16xf32, #tpu.memory_space<vmem>>, %arg1: memref<136x128xf32, #tpu.memory_space<vmem>>, %arg2: memref<2x2xf32, #tpu.memory_space<vmem>>, %arg3: memref<8x2x32xf32, #tpu.memory_space<vmem>>) attributes {dimension_semantics = [], scalar_prefetch = 0 : i64, scratch_operands = 0 : i64, tpu.core_type = #tpu.core_type<tc>} {
    %c0 = arith.constant 0 : index
    %c0_0 = arith.constant 0 : index
    %0 = vector.load %arg1[%c0, %c0_0] : memref<136x128xf32, #tpu.memory_space<vmem>>, vector<16x128xf32>
    %c16 = arith.constant 16 : index
    %c0_1 = arith.constant 0 : index
    %1 = vector.load %arg1[%c16, %c0_1] : memref<136x128xf32, #tpu.memory_space<vmem>>, vector<32x128xf32>
    %c48 = arith.constant 48 : index
    %c0_2 = arith.constant 0 : index
    %2 = vector.load %arg1[%c48, %c0_2] : memref<136x128xf32, #tpu.memory_space<vmem>>, vector<1x128xf32>
    %c0_3 = arith.constant 0 : index
    %c0_4 = arith.constant 0 : index
    %3 = vector.load %arg0[%c0_3, %c0_4] : memref<16x16xf32, #tpu.memory_space<vmem>>, vector<16x16xf32>
    %cst = arith.constant dense<0.000000e+00> : vector<16x128xf32>
    %4 = tpu.matmul %3, %0, %cst {dimension_numbers = #tpu.dot_dimension_numbers<[1], [0], [0], [1], [0, 0, 1, 1], [], []>} : vector<16x16xf32>, vector<16x128xf32>, vector<16x128xf32> -> vector<16x128xf32>
    %5 = vector.broadcast %2 : vector<1x128xf32> to vector<16x128xf32>
    %6 = arith.addf %4, %5 : vector<16x128xf32>
    %cst_5 = arith.constant 0.000000e+00 : f32
    %7 = vector.broadcast %cst_5 : f32 to vector<2x32xf32>
    %8 = vector.extract_strided_slice %6 {offsets = [0, 0], sizes = [2, 128], strides = [1, 1]} : vector<16x128xf32> to vector<2x128xf32>
    %9 = arith.negf %8 : vector<2x128xf32>
    %10 = math.exp %9 : vector<2x128xf32>
    %cst_6 = arith.constant 1.000000e+00 : f32
    %11 = vector.broadcast %cst_6 : f32 to vector<2x128xf32>
    %12 = arith.addf %11, %10 : vector<2x128xf32>
    %13 = arith.divf %11, %12 : vector<2x128xf32>
    %14 = math.tanh %8 : vector<2x128xf32>
    %15 = vector.extract_strided_slice %13 {offsets = [0, 0], sizes = [2, 32], strides = [1, 1]} : vector<2x128xf32> to vector<2x32xf32>
    %16 = vector.extract_strided_slice %13 {offsets = [0, 32], sizes = [2, 32], strides = [1, 1]} : vector<2x128xf32> to vector<2x32xf32>
    %17 = vector.extract_strided_slice %14 {offsets = [0, 64], sizes = [2, 32], strides = [1, 1]} : vector<2x128xf32> to vector<2x32xf32>
    %18 = vector.extract_strided_slice %13 {offsets = [0, 96], sizes = [2, 32], strides = [1, 1]} : vector<2x128xf32> to vector<2x32xf32>
    %19 = arith.mulf %16, %7 : vector<2x32xf32>
    %20 = arith.mulf %15, %17 : vector<2x32xf32>
    %21 = arith.addf %19, %20 : vector<2x32xf32>
    %22 = math.tanh %21 : vector<2x32xf32>
    %23 = arith.mulf %18, %22 : vector<2x32xf32>
    %c0_7 = arith.constant 0 : index
    %c0_8 = arith.constant 0 : index
    %c0_9 = arith.constant 0 : index
    %24 = vector.load %arg3[%c0_7, %c0_8, %c0_9] : memref<8x2x32xf32, #tpu.memory_space<vmem>>, vector<1x2x32xf32>
    %25 = vector.shape_cast %24 : vector<1x2x32xf32> to vector<2x32xf32>
    %26 = vector.shape_cast %23 : vector<2x32xf32> to vector<1x2x32xf32>
    tpu.vector_store %arg3[%c0_7, %c0_8, %c0_9], %26 {strides = array<i32>} : memref<8x2x32xf32, #tpu.memory_space<vmem>>, vector<1x2x32xf32>,
    %27 = vector.extract_strided_slice %6 {offsets = [2, 0], sizes = [2, 128], strides = [1, 1]} : vector<16x128xf32> to vector<2x128xf32>
    %cst_10 = arith.constant dense<0.000000e+00> : vector<2x128xf32>
    %28 = tpu.matmul %23, %1, %cst_10 {dimension_numbers = #tpu.dot_dimension_numbers<[1], [0], [0], [1], [0, 0, 1, 1], [], []>} : vector<2x32xf32>, vector<32x128xf32>, vector<2x128xf32> -> vector<2x128xf32>
    %29 = arith.addf %27, %28 : vector<2x128xf32>
    %30 = arith.negf %29 : vector<2x128xf32>
    %31 = math.exp %30 : vector<2x128xf32>
    %cst_11 = arith.constant 1.000000e+00 : f32
    %32 = vector.broadcast %cst_11 : f32 to vector<2x128xf32>
    %33 = arith.addf %32, %31 : vector<2x128xf32>
    %34 = arith.divf %32, %33 : vector<2x128xf32>
    %35 = math.tanh %29 : vector<2x128xf32>
    %36 = vector.extract_strided_slice %34 {offsets = [0, 0], sizes = [2, 32], strides = [1, 1]} : vector<2x128xf32> to vector<2x32xf32>
    %37 = vector.extract_strided_slice %34 {offsets = [0, 32], sizes = [2, 32], strides = [1, 1]} : vector<2x128xf32> to vector<2x32xf32>
    %38 = vector.extract_strided_slice %35 {offsets = [0, 64], sizes = [2, 32], strides = [1, 1]} : vector<2x128xf32> to vector<2x32xf32>
    %39 = vector.extract_strided_slice %34 {offsets = [0, 96], sizes = [2, 32], strides = [1, 1]} : vector<2x128xf32> to vector<2x32xf32>
    %40 = arith.mulf %37, %21 : vector<2x32xf32>
    %41 = arith.mulf %36, %38 : vector<2x32xf32>
    %42 = arith.addf %40, %41 : vector<2x32xf32>
    %43 = math.tanh %42 : vector<2x32xf32>
    %44 = arith.mulf %39, %43 : vector<2x32xf32>
    %c1 = arith.constant 1 : index
    %c0_12 = arith.constant 0 : index
    %c0_13 = arith.constant 0 : index
    %45 = vector.load %arg3[%c1, %c0_12, %c0_13] : memref<8x2x32xf32, #tpu.memory_space<vmem>>, vector<1x2x32xf32>
    %46 = vector.shape_cast %45 : vector<1x2x32xf32> to vector<2x32xf32>
    %47 = vector.shape_cast %44 : vector<2x32xf32> to vector<1x2x32xf32>
    tpu.vector_store %arg3[%c1, %c0_12, %c0_13], %47 {strides = array<i32>} : memref<8x2x32xf32, #tpu.memory_space<vmem>>, vector<1x2x32xf32>,
    %48 = vector.extract_strided_slice %6 {offsets = [4, 0], sizes = [2, 128], strides = [1, 1]} : vector<16x128xf32> to vector<2x128xf32>
    %cst_14 = arith.constant dense<0.000000e+00> : vector<2x128xf32>
    %49 = tpu.matmul %44, %1, %cst_14 {dimension_numbers = #tpu.dot_dimension_numbers<[1], [0], [0], [1], [0, 0, 1, 1], [], []>} : vector<2x32xf32>, vector<32x128xf32>, vector<2x128xf32> -> vector<2x128xf32>
    %50 = arith.addf %48, %49 : vector<2x128xf32>
    %51 = arith.negf %50 : vector<2x128xf32>
    %52 = math.exp %51 : vector<2x128xf32>
    %cst_15 = arith.constant 1.000000e+00 : f32
    %53 = vector.broadcast %cst_15 : f32 to vector<2x128xf32>
    %54 = arith.addf %53, %52 : vector<2x128xf32>
    %55 = arith.divf %53, %54 : vector<2x128xf32>
    %56 = math.tanh %50 : vector<2x128xf32>
    %57 = vector.extract_strided_slice %55 {offsets = [0, 0], sizes = [2, 32], strides = [1, 1]} : vector<2x128xf32> to vector<2x32xf32>
    %58 = vector.extract_strided_slice %55 {offsets = [0, 32], sizes = [2, 32], strides = [1, 1]} : vector<2x128xf32> to vector<2x32xf32>
    %59 = vector.extract_strided_slice %56 {offsets = [0, 64], sizes = [2, 32], strides = [1, 1]} : vector<2x128xf32> to vector<2x32xf32>
    %60 = vector.extract_strided_slice %55 {offsets = [0, 96], sizes = [2, 32], strides = [1, 1]} : vector<2x128xf32> to vector<2x32xf32>
    %61 = arith.mulf %58, %42 : vector<2x32xf32>
    %62 = arith.mulf %57, %59 : vector<2x32xf32>
    %63 = arith.addf %61, %62 : vector<2x32xf32>
    %64 = math.tanh %63 : vector<2x32xf32>
    %65 = arith.mulf %60, %64 : vector<2x32xf32>
    %c2 = arith.constant 2 : index
    %c0_16 = arith.constant 0 : index
    %c0_17 = arith.constant 0 : index
    %66 = vector.load %arg3[%c2, %c0_16, %c0_17] : memref<8x2x32xf32, #tpu.memory_space<vmem>>, vector<1x2x32xf32>
    %67 = vector.shape_cast %66 : vector<1x2x32xf32> to vector<2x32xf32>
    %68 = vector.shape_cast %65 : vector<2x32xf32> to vector<1x2x32xf32>
    tpu.vector_store %arg3[%c2, %c0_16, %c0_17], %68 {strides = array<i32>} : memref<8x2x32xf32, #tpu.memory_space<vmem>>, vector<1x2x32xf32>,
    %69 = vector.extract_strided_slice %6 {offsets = [6, 0], sizes = [2, 128], strides = [1, 1]} : vector<16x128xf32> to vector<2x128xf32>
    %cst_18 = arith.constant dense<0.000000e+00> : vector<2x128xf32>
    %70 = tpu.matmul %65, %1, %cst_18 {dimension_numbers = #tpu.dot_dimension_numbers<[1], [0], [0], [1], [0, 0, 1, 1], [], []>} : vector<2x32xf32>, vector<32x128xf32>, vector<2x128xf32> -> vector<2x128xf32>
    %71 = arith.addf %69, %70 : vector<2x128xf32>
    %72 = arith.negf %71 : vector<2x128xf32>
    %73 = math.exp %72 : vector<2x128xf32>
    %cst_19 = arith.constant 1.000000e+00 : f32
    %74 = vector.broadcast %cst_19 : f32 to vector<2x128xf32>
    %75 = arith.addf %74, %73 : vector<2x128xf32>
    %76 = arith.divf %74, %75 : vector<2x128xf32>
    %77 = math.tanh %71 : vector<2x128xf32>
    %78 = vector.extract_strided_slice %76 {offsets = [0, 0], sizes = [2, 32], strides = [1, 1]} : vector<2x128xf32> to vector<2x32xf32>
    %79 = vector.extract_strided_slice %76 {offsets = [0, 32], sizes = [2, 32], strides = [1, 1]} : vector<2x128xf32> to vector<2x32xf32>
    %80 = vector.extract_strided_slice %77 {offsets = [0, 64], sizes = [2, 32], strides = [1, 1]} : vector<2x128xf32> to vector<2x32xf32>
    %81 = vector.extract_strided_slice %76 {offsets = [0, 96], sizes = [2, 32], strides = [1, 1]} : vector<2x128xf32> to vector<2x32xf32>
    %82 = arith.mulf %79, %63 : vector<2x32xf32>
    %83 = arith.mulf %78, %80 : vector<2x32xf32>
    %84 = arith.addf %82, %83 : vector<2x32xf32>
    %85 = math.tanh %84 : vector<2x32xf32>
    %86 = arith.mulf %81, %85 : vector<2x32xf32>
    %c3 = arith.constant 3 : index
    %c0_20 = arith.constant 0 : index
    %c0_21 = arith.constant 0 : index
    %87 = vector.load %arg3[%c3, %c0_20, %c0_21] : memref<8x2x32xf32, #tpu.memory_space<vmem>>, vector<1x2x32xf32>
    %88 = vector.shape_cast %87 : vector<1x2x32xf32> to vector<2x32xf32>
    %89 = vector.shape_cast %86 : vector<2x32xf32> to vector<1x2x32xf32>
    tpu.vector_store %arg3[%c3, %c0_20, %c0_21], %89 {strides = array<i32>} : memref<8x2x32xf32, #tpu.memory_space<vmem>>, vector<1x2x32xf32>,
    %90 = vector.extract_strided_slice %6 {offsets = [8, 0], sizes = [2, 128], strides = [1, 1]} : vector<16x128xf32> to vector<2x128xf32>
    %cst_22 = arith.constant dense<0.000000e+00> : vector<2x128xf32>
    %91 = tpu.matmul %86, %1, %cst_22 {dimension_numbers = #tpu.dot_dimension_numbers<[1], [0], [0], [1], [0, 0, 1, 1], [], []>} : vector<2x32xf32>, vector<32x128xf32>, vector<2x128xf32> -> vector<2x128xf32>
    %92 = arith.addf %90, %91 : vector<2x128xf32>
    %93 = arith.negf %92 : vector<2x128xf32>
    %94 = math.exp %93 : vector<2x128xf32>
    %cst_23 = arith.constant 1.000000e+00 : f32
    %95 = vector.broadcast %cst_23 : f32 to vector<2x128xf32>
    %96 = arith.addf %95, %94 : vector<2x128xf32>
    %97 = arith.divf %95, %96 : vector<2x128xf32>
    %98 = math.tanh %92 : vector<2x128xf32>
    %99 = vector.extract_strided_slice %97 {offsets = [0, 0], sizes = [2, 32], strides = [1, 1]} : vector<2x128xf32> to vector<2x32xf32>
    %100 = vector.extract_strided_slice %97 {offsets = [0, 32], sizes = [2, 32], strides = [1, 1]} : vector<2x128xf32> to vector<2x32xf32>
    %101 = vector.extract_strided_slice %98 {offsets = [0, 64], sizes = [2, 32], strides = [1, 1]} : vector<2x128xf32> to vector<2x32xf32>
    %102 = vector.extract_strided_slice %97 {offsets = [0, 96], sizes = [2, 32], strides = [1, 1]} : vector<2x128xf32> to vector<2x32xf32>
    %103 = arith.mulf %100, %84 : vector<2x32xf32>
    %104 = arith.mulf %99, %101 : vector<2x32xf32>
    %105 = arith.addf %103, %104 : vector<2x32xf32>
    %106 = math.tanh %105 : vector<2x32xf32>
    %107 = arith.mulf %102, %106 : vector<2x32xf32>
    %c4 = arith.constant 4 : index
    %c0_24 = arith.constant 0 : index
    %c0_25 = arith.constant 0 : index
    %108 = vector.load %arg3[%c4, %c0_24, %c0_25] : memref<8x2x32xf32, #tpu.memory_space<vmem>>, vector<1x2x32xf32>
    %109 = vector.shape_cast %108 : vector<1x2x32xf32> to vector<2x32xf32>
    %110 = vector.shape_cast %107 : vector<2x32xf32> to vector<1x2x32xf32>
    tpu.vector_store %arg3[%c4, %c0_24, %c0_25], %110 {strides = array<i32>} : memref<8x2x32xf32, #tpu.memory_space<vmem>>, vector<1x2x32xf32>,
    %111 = vector.extract_strided_slice %6 {offsets = [10, 0], sizes = [2, 128], strides = [1, 1]} : vector<16x128xf32> to vector<2x128xf32>
    %cst_26 = arith.constant dense<0.000000e+00> : vector<2x128xf32>
    %112 = tpu.matmul %107, %1, %cst_26 {dimension_numbers = #tpu.dot_dimension_numbers<[1], [0], [0], [1], [0, 0, 1, 1], [], []>} : vector<2x32xf32>, vector<32x128xf32>, vector<2x128xf32> -> vector<2x128xf32>
    %113 = arith.addf %111, %112 : vector<2x128xf32>
    %114 = arith.negf %113 : vector<2x128xf32>
    %115 = math.exp %114 : vector<2x128xf32>
    %cst_27 = arith.constant 1.000000e+00 : f32
    %116 = vector.broadcast %cst_27 : f32 to vector<2x128xf32>
    %117 = arith.addf %116, %115 : vector<2x128xf32>
    %118 = arith.divf %116, %117 : vector<2x128xf32>
    %119 = math.tanh %113 : vector<2x128xf32>
    %120 = vector.extract_strided_slice %118 {offsets = [0, 0], sizes = [2, 32], strides = [1, 1]} : vector<2x128xf32> to vector<2x32xf32>
    %121 = vector.extract_strided_slice %118 {offsets = [0, 32], sizes = [2, 32], strides = [1, 1]} : vector<2x128xf32> to vector<2x32xf32>
    %122 = vector.extract_strided_slice %119 {offsets = [0, 64], sizes = [2, 32], strides = [1, 1]} : vector<2x128xf32> to vector<2x32xf32>
    %123 = vector.extract_strided_slice %118 {offsets = [0, 96], sizes = [2, 32], strides = [1, 1]} : vector<2x128xf32> to vector<2x32xf32>
    %124 = arith.mulf %121, %105 : vector<2x32xf32>
    %125 = arith.mulf %120, %122 : vector<2x32xf32>
    %126 = arith.addf %124, %125 : vector<2x32xf32>
    %127 = math.tanh %126 : vector<2x32xf32>
    %128 = arith.mulf %123, %127 : vector<2x32xf32>
    %c5 = arith.constant 5 : index
    %c0_28 = arith.constant 0 : index
    %c0_29 = arith.constant 0 : index
    %129 = vector.load %arg3[%c5, %c0_28, %c0_29] : memref<8x2x32xf32, #tpu.memory_space<vmem>>, vector<1x2x32xf32>
    %130 = vector.shape_cast %129 : vector<1x2x32xf32> to vector<2x32xf32>
    %131 = vector.shape_cast %128 : vector<2x32xf32> to vector<1x2x32xf32>
    tpu.vector_store %arg3[%c5, %c0_28, %c0_29], %131 {strides = array<i32>} : memref<8x2x32xf32, #tpu.memory_space<vmem>>, vector<1x2x32xf32>,
    %132 = vector.extract_strided_slice %6 {offsets = [12, 0], sizes = [2, 128], strides = [1, 1]} : vector<16x128xf32> to vector<2x128xf32>
    %cst_30 = arith.constant dense<0.000000e+00> : vector<2x128xf32>
    %133 = tpu.matmul %128, %1, %cst_30 {dimension_numbers = #tpu.dot_dimension_numbers<[1], [0], [0], [1], [0, 0, 1, 1], [], []>} : vector<2x32xf32>, vector<32x128xf32>, vector<2x128xf32> -> vector<2x128xf32>
    %134 = arith.addf %132, %133 : vector<2x128xf32>
    %135 = arith.negf %134 : vector<2x128xf32>
    %136 = math.exp %135 : vector<2x128xf32>
    %cst_31 = arith.constant 1.000000e+00 : f32
    %137 = vector.broadcast %cst_31 : f32 to vector<2x128xf32>
    %138 = arith.addf %137, %136 : vector<2x128xf32>
    %139 = arith.divf %137, %138 : vector<2x128xf32>
    %140 = math.tanh %134 : vector<2x128xf32>
    %141 = vector.extract_strided_slice %139 {offsets = [0, 0], sizes = [2, 32], strides = [1, 1]} : vector<2x128xf32> to vector<2x32xf32>
    %142 = vector.extract_strided_slice %139 {offsets = [0, 32], sizes = [2, 32], strides = [1, 1]} : vector<2x128xf32> to vector<2x32xf32>
    %143 = vector.extract_strided_slice %140 {offsets = [0, 64], sizes = [2, 32], strides = [1, 1]} : vector<2x128xf32> to vector<2x32xf32>
    %144 = vector.extract_strided_slice %139 {offsets = [0, 96], sizes = [2, 32], strides = [1, 1]} : vector<2x128xf32> to vector<2x32xf32>
    %145 = arith.mulf %142, %126 : vector<2x32xf32>
    %146 = arith.mulf %141, %143 : vector<2x32xf32>
    %147 = arith.addf %145, %146 : vector<2x32xf32>
    %148 = math.tanh %147 : vector<2x32xf32>
    %149 = arith.mulf %144, %148 : vector<2x32xf32>
    %c6 = arith.constant 6 : index
    %c0_32 = arith.constant 0 : index
    %c0_33 = arith.constant 0 : index
    %150 = vector.load %arg3[%c6, %c0_32, %c0_33] : memref<8x2x32xf32, #tpu.memory_space<vmem>>, vector<1x2x32xf32>
    %151 = vector.shape_cast %150 : vector<1x2x32xf32> to vector<2x32xf32>
    %152 = vector.shape_cast %149 : vector<2x32xf32> to vector<1x2x32xf32>
    tpu.vector_store %arg3[%c6, %c0_32, %c0_33], %152 {strides = array<i32>} : memref<8x2x32xf32, #tpu.memory_space<vmem>>, vector<1x2x32xf32>,
    %153 = vector.extract_strided_slice %6 {offsets = [14, 0], sizes = [2, 128], strides = [1, 1]} : vector<16x128xf32> to vector<2x128xf32>
    %cst_34 = arith.constant dense<0.000000e+00> : vector<2x128xf32>
    %154 = tpu.matmul %149, %1, %cst_34 {dimension_numbers = #tpu.dot_dimension_numbers<[1], [0], [0], [1], [0, 0, 1, 1], [], []>} : vector<2x32xf32>, vector<32x128xf32>, vector<2x128xf32> -> vector<2x128xf32>
    %155 = arith.addf %153, %154 : vector<2x128xf32>
    %156 = arith.negf %155 : vector<2x128xf32>
    %157 = math.exp %156 : vector<2x128xf32>
    %cst_35 = arith.constant 1.000000e+00 : f32
    %158 = vector.broadcast %cst_35 : f32 to vector<2x128xf32>
    %159 = arith.addf %158, %157 : vector<2x128xf32>
    %160 = arith.divf %158, %159 : vector<2x128xf32>
    %161 = math.tanh %155 : vector<2x128xf32>
    %162 = vector.extract_strided_slice %160 {offsets = [0, 0], sizes = [2, 32], strides = [1, 1]} : vector<2x128xf32> to vector<2x32xf32>
    %163 = vector.extract_strided_slice %160 {offsets = [0, 32], sizes = [2, 32], strides = [1, 1]} : vector<2x128xf32> to vector<2x32xf32>
    %164 = vector.extract_strided_slice %161 {offsets = [0, 64], sizes = [2, 32], strides = [1, 1]} : vector<2x128xf32> to vector<2x32xf32>
    %165 = vector.extract_strided_slice %160 {offsets = [0, 96], sizes = [2, 32], strides = [1, 1]} : vector<2x128xf32> to vector<2x32xf32>
    %166 = arith.mulf %163, %147 : vector<2x32xf32>
    %167 = arith.mulf %162, %164 : vector<2x32xf32>
    %168 = arith.addf %166, %167 : vector<2x32xf32>
    %169 = math.tanh %168 : vector<2x32xf32>
    %170 = arith.mulf %165, %169 : vector<2x32xf32>
    %c7 = arith.constant 7 : index
    %c0_36 = arith.constant 0 : index
    %c0_37 = arith.constant 0 : index
    %171 = vector.load %arg3[%c7, %c0_36, %c0_37] : memref<8x2x32xf32, #tpu.memory_space<vmem>>, vector<1x2x32xf32>
    %172 = vector.shape_cast %171 : vector<1x2x32xf32> to vector<2x32xf32>
    %173 = vector.shape_cast %170 : vector<2x32xf32> to vector<1x2x32xf32>
    tpu.vector_store %arg3[%c7, %c0_36, %c0_37], %173 {strides = array<i32>} : memref<8x2x32xf32, #tpu.memory_space<vmem>>, vector<1x2x32xf32>,
    %c56 = arith.constant 56 : index
    %c0_38 = arith.constant 0 : index
    %174 = vector.load %arg1[%c56, %c0_38] : memref<136x128xf32, #tpu.memory_space<vmem>>, vector<32x32xf32>
    %c88 = arith.constant 88 : index
    %c0_39 = arith.constant 0 : index
    %175 = vector.load %arg1[%c88, %c0_39] : memref<136x128xf32, #tpu.memory_space<vmem>>, vector<1x32xf32>
    %c96 = arith.constant 96 : index
    %c0_40 = arith.constant 0 : index
    %176 = vector.load %arg1[%c96, %c0_40] : memref<136x128xf32, #tpu.memory_space<vmem>>, vector<32x2xf32>
    %c128 = arith.constant 128 : index
    %c0_41 = arith.constant 0 : index
    %177 = vector.load %arg1[%c128, %c0_41] : memref<136x128xf32, #tpu.memory_space<vmem>>, vector<1x2xf32>
    %cst_42 = arith.constant dense<0.000000e+00> : vector<2x32xf32>
    %178 = tpu.matmul %170, %174, %cst_42 {dimension_numbers = #tpu.dot_dimension_numbers<[1], [0], [0], [1], [0, 0, 1, 1], [], []>} : vector<2x32xf32>, vector<32x32xf32>, vector<2x32xf32> -> vector<2x32xf32>
    %179 = vector.broadcast %175 : vector<1x32xf32> to vector<2x32xf32>
    %180 = arith.addf %178, %179 : vector<2x32xf32>
    %cst_43 = arith.constant 0.000000e+00 : f32
    %181 = vector.broadcast %cst_43 : f32 to vector<2x32xf32>
    %182 = arith.maximumf %180, %181 : vector<2x32xf32>
    %cst_44 = arith.constant dense<0.000000e+00> : vector<2x2xf32>
    %183 = tpu.matmul %182, %176, %cst_44 {dimension_numbers = #tpu.dot_dimension_numbers<[1], [0], [0], [1], [0, 0, 1, 1], [], []>} : vector<2x32xf32>, vector<32x2xf32>, vector<2x2xf32> -> vector<2x2xf32>
    %184 = vector.broadcast %177 : vector<1x2xf32> to vector<2x2xf32>
    %185 = arith.addf %183, %184 : vector<2x2xf32>
    %c0_45 = arith.constant 0 : index
    %c0_46 = arith.constant 0 : index
    %186 = vector.load %arg2[%c0_45, %c0_46] : memref<2x2xf32, #tpu.memory_space<vmem>>, vector<2x2xf32>
    tpu.vector_store %arg2[%c0_45, %c0_46], %185 {strides = array<i32>} : memref<2x2xf32, #tpu.memory_space<vmem>>, vector<2x2xf32>,
    return
  }
}

</mosaic_0001>

<bundles_post_ra>
// kernel: rnn_forward.1
= control target key start
LH: loop header
LB: loop body
LE: loop exit
PB: predicated region body
PF: predicated region fallthrough
CT: control target
= control target key end

     0   :  { %9 = vsyncpa [#allocation3], 0  ;;  %s1702_s0 = inlined_call_operand.vmem [shape: f32[16,16], index: 0, kind: input, shape index: {}]   ;;  %s1703_s1 = inlined_call_operand.hbm [shape: f32[136,128], index: 1, kind: input, shape index: {}]   ;;  %s1704_s2 = inlined_call_operand.hbm [shape: f32[2,2], index: 2, kind: output, shape index: {0}]   ;;  %s1705_s3 = inlined_call_operand.vmem [shape: f32[8,2,32], index: 3, kind: output, shape index: {1}]  }
   0x1   :  { %10 = vsyncpa [#allocation4], 0  ;;  %s1483_s12 = smov [#allocation2]   ;;  %s1435_s16 = scalar_lea.hbm %s1703_s1, 2176 }
   0x2   :  { %s18_s13 = sshll.u32 %s1483_s12, 4  ;;  %p1436_p0 = scmp.ne.s32.totalorder %s1703_s1, %s1435_s16  ;;  %s19_s13 = int_to_ptr.vmem [resolvable:$true] %s18_s13 }
   0x3   :  { %p1439_p1 = scmp.lt.u32.totalorder %s1435_s16, %s1703_s1 }
   0x5   :  { %p1441_p2 = pnand %p1439_p1, %p1436_p0 }
   0x7   :  { %1444 = shalt.err (!%p1441_p2)
}
   0x8   :  { %s1445_s21 = scalar_lea.vmem %s19_s13, 2176  ;;  %p1450_p4 = scmp.lt.s32.totalorder %s19_s13, %s19_s13 }
   0x9   :  { %p1446_p3 = scmp.ne.s32.totalorder %s19_s13, %s1445_s21  ;;  %p1451_p5 = scmp.lt.s32.totalorder %s1445_s21, %s1445_s21 }
   0xb   :  { %p1452_p6 = por %p1451_p5, %p1450_p4 }
   0xd   :  { %p1453_p7 = pnand %p1452_p6, %p1446_p3 }
   0xf   :  { %1456 = shalt.err (!%p1453_p7)
}
  0x10   :  { %s1484_s22 = smov 128   ;;  %s1485_s23 = smov 8  }
  0x11   :  { %24 = dma.hbm_to_vmem [thread:$0]  %s1703_s1, 2176, %s19_s13, [#allocation3], %s1484_s22, %s1484_s22, %s1485_s23  }
  0x12   :  { %1479 = dma.done.wait [#allocation3], 2176  }
  0x13   :  { %1480 = vsyncadd [#allocation3], 4294965120  ;;  %vm41_vm0 = vcmask 130048   ;;  %v28_v0 = vld [vmem:[#allocation2] sm:$0xff]  ;;  %v29_v1 = vld [vmem:[#allocation2 + $0x8] sm:$0xff]  ;;  %s1486_s1 = smov 64  }
  0x14   :  { %v35_v2 = vld [vmem:[%s1702_s0] sm:$0xff]  ;;  %v1304_v3 = vpack.c.bf16 %v29_v1, %v28_v0  ;;  %v36_v4 = vld [vmem:[%s1702_s0 + $0x8] sm:$0xff]  ;;  %v1120_v5 = vld [vmem:[#allocation2 + $0x30] ss:$0 sm:$0xff]  ;;  %s1487_s0 = smov 32   ;;  %v1488_v23 = vmov 0.0|0.0  }
  0x15   :  { %1202 = vmatprep.mubr.msk.f32.mxu0 %vm41_vm0, %v35_v2  ;;  %v30_v20 = vld [vmem:[#allocation2 + $0x10] sm:$0xff]  ;;  %v31_v21 = vld [vmem:[#allocation2 + $0x18] sm:$0xff]  ;;  %v32_v22 = vld [vmem:[#allocation2 + $0x20] sm:$0xff]  ;;  %1308 = vmatprep.subr.bf16.mxu1 %v1488_v23  ;;  %vm1489_vm1 = vmmov 0   ;;  %v1490_v26 = vmov 0.0   ;;  %vm151_vm2 = vcmask 254976  }
  0x16   :  { %1305 = vmatprep.subr.bf16.mxu0 %v1304_v3  ;;  %v1539_v24 = vpack.c.bf16 %v31_v21, %v30_v20  ;;  %v33_v25 = vld [vmem:[#allocation2 + $0x28] sm:$0xff]  ;;  %1213 = vmatprep.mubr.msk.f32.mxu1 %vm1489_vm1, %v1490_v26  ;;  %vm153_vm3 = vcmask 261120   ;;  %vm262_vm4 = vcmask 257026   ;;  %vm488_vm5 = vcmask 261126   ;;  %s1491_s19 = smov [#allocation5]  }
  0x17   :  { %1307 = vmatpush3.bf16.msra.mxu0 %v1304_v3  ;;  %v1547_v27 = vpack.c.bf16 %v33_v25, %v32_v22  ;;  %vm375_vm6 = vcmask 259076   ;;  %s1107_s20 = sshll.u32 %s1491_s19, 4  ;;  %vm1099_vm7 = vcmask 9216   ;;  %s1108_s20 = int_to_ptr.vmem [resolvable:$true] %s1107_s20 }
  0x18   :  { %1314 = vmatprep.subr.bf16.mxu0 %v1488_v23  ;;  %1310 = vmatpush3.bf16.msra.mxu1 %v1539_v24  ;;  %p1462_p9 = scmp.lt.s32.totalorder %s1108_s20, %s1108_s20 }
  0x19   :  { %1311 = vmatprep.subr.bf16.mxu1 %v1488_v23 }
  0x1a   :  { %1203 = vmatmul.mubr.msk.f32.vlgmr.msra.gmra.mrb[0].mxu0 %vm41_vm0, %v36_v4 }
  0x1b   :  { %1224 = vmatprep.mubr.msk.f32.mxu0 %vm1489_vm1, %v1490_v26  ;;  %1316 = vmatpush3.bf16.msra.mxu0 %v1539_v24 }
  0x1c   :  { %1317 = vmatprep.subr.bf16.mxu0 %v1488_v23  ;;  %1313 = vmatpush3.bf16.msra.mxu1 %v1547_v27 }
  0x1d   :  { %1320 = vmatprep.subr.bf16.mxu1 %v1488_v23 }
  0x1f   :  { %1319 = vmatpush3.bf16.msra.mxu0 %v1547_v27 }
  0x20   :  { %1326 = vmatprep.subr.bf16.mxu0 %v1488_v23 }
  0xed   :  { %v1204_v6 = vpop.f32.mrb[0].mxu0 }
  0xee   :  { %v1530_v7 = vadd.f32 %v1204_v6, %v1120_v5  ;;  %v114_v8 = vpop.f32.mrb[1].mxu0 }
  0xef   :  { %v1532_v9 = vadd.f32 %v1120_v5, %v114_v8 }
  0xf1   :  { %1371 = vtanh.f32 %v1532_v9  ;;  %v1123_v11 = vmul.f32 -1.442695, %v1532_v9 }
  0xf3   :  { %1373 = vpow2.f32 %v1123_v11 }
  0xfb   :  { %v1372_v10 = vpop.eup %1371 }
  0xfc   :  { %132 = vrot.lane.b32.xlu0 %v1372_v10, %s1486_s1 }
  0xfd   :  { %v1374_v12 = vpop.eup %1373 }
  0xfe   :  { %v126_v13 = vadd.f32 1.0, %v1374_v12 }
 0x100   :  { %1375 = vrcp.f32 %v126_v13 }
 0x10a   :  { %v1376_v14 = vpop.eup %1375 }
 0x10b   :  { %v130_v17 = vmul.f32 0.0, %v1376_v14 }
 0x16e   :  { %v133_v15 = vpop.permute.xlu0 %132 }
 0x16f   :  { %v135_v16 = vmul.f32 %v1376_v14, %v133_v15 }
 0x171   :  { %137 = vrot.lane.b32.xlu0 %v135_v16, %s1487_s0 }
 0x1e3   :  { %v138_v18 = vpop.permute.xlu0 %137 }
 0x1e4   :  { %v140_v19 = vadd.f32 %v138_v18, %v130_v17 }
 0x1e6   :  { %1377 = vtanh.f32 %v140_v19  ;;  %v238_v43 = vrot.slane %v140_v19, 6 }
 0x1f0   :  { %v1378_v28 = vpop.eup %1377 }
 0x1f1   :  { %143 = vrot.lane.b32.xlu1 %v1378_v28, %s1486_s1 }
 0x263   :  { %v144_v29 = vpop.permute.xlu1 %143 }
 0x264   :  { %v146_v30 = vmul.f32 %v1376_v14, %v144_v29 }
 0x266   :  { %148 = vrot.lane.b32.xlu1 %v146_v30, %s1487_s0 }
 0x2d8   :  { %v149_v31 = vpop.permute.xlu1 %148 }
 0x2d9   :  { %152 = vst.msk [vmem:[%s1705_s3] sm:$0x3] %vm151_vm2, %v149_v31  ;;  %1214 = vmatmul.mubr.msk.f32.vlgmr.msra.gmra.mrb[0].mxu1 %vm153_vm3, %v149_v31 }
 0x2da   :  { %1322 = vmatpush3.bf16.msra.mxu1 %v1539_v24  ;;  %1235 = vmatprep.mubr.msk.f32.mxu1 %vm1489_vm1, %v1490_v26 }
 0x2db   :  { %1323 = vmatprep.subr.bf16.mxu1 %v1488_v23 }
 0x2de   :  { %1325 = vmatpush3.bf16.msra.mxu1 %v1547_v27 }
 0x2df   :  { %1332 = vmatprep.subr.bf16.mxu1 %v1488_v23 }
 0x3ac   :  { %v222_v32 = vpop.f32.mrb[0].mxu1 }
 0x3ad   :  { %v227_v33 = vrot.slane %v222_v32, 6  ;;  %v1215_v34 = vpop.f32.mrb[1].mxu1 }
 0x3af   :  { %v229_v35 = vadd.f32 %v227_v33, %v1532_v9 }
 0x3b1   :  { %1379 = vtanh.f32 %v229_v35  ;;  %v1125_v37 = vmul.f32 -1.442695, %v229_v35 }
 0x3b3   :  { %1381 = vpow2.f32 %v1125_v37 }
 0x3bb   :  { %v1380_v36 = vpop.eup %1379 }
 0x3bc   :  { %242 = vrot.lane.b32.xlu0 %v1380_v36, %s1486_s1 }
 0x3bd   :  { %v1382_v38 = vpop.eup %1381 }
 0x3be   :  { %v233_v39 = vadd.f32 1.0, %v1382_v38 }
 0x3c0   :  { %1383 = vrcp.f32 %v233_v39 }
 0x3ca   :  { %v1384_v40 = vpop.eup %1383 }
 0x3cb   :  { %v240_v44 = vmul.f32 %v1384_v40, %v238_v43 }
 0x42e   :  { %v243_v41 = vpop.permute.xlu0 %242 }
 0x42f   :  { %v245_v42 = vmul.f32 %v1384_v40, %v243_v41 }
 0x431   :  { %247 = vrot.lane.b32.xlu1 %v245_v42, %s1487_s0 }
 0x4a3   :  { %v248_v45 = vpop.permute.xlu1 %247 }
 0x4a4   :  { %v250_v46 = vadd.f32 %v248_v45, %v240_v44 }
 0x4a6   :  { %1385 = vtanh.f32 %v250_v46  ;;  %v351_v63 = vrot.slane %v250_v46, 6 }
 0x4b0   :  { %v1386_v47 = vpop.eup %1385 }
 0x4b1   :  { %253 = vrot.lane.b32.xlu0 %v1386_v47, %s1486_s1 }
 0x523   :  { %v254_v48 = vpop.permute.xlu0 %253 }
 0x524   :  { %v1573_v49 = vmul.f32 %v1384_v40, %v254_v48 }
 0x526   :  { %v264_v50 = vrot.slane %v1573_v49, 2 }
 0x528   :  { %265 = vrot.lane.b32.xlu1 %v264_v50, %s1487_s0 }
 0x59a   :  { %v266_v51 = vpop.permute.xlu1 %265 }
 0x59b   :  { %1225 = vmatmul.mubr.msk.f32.vlgmr.msra.gmra.mrb[2].mxu0 %vm153_vm3, %v266_v51 }
 0x59c   :  { %1328 = vmatpush3.bf16.msra.mxu0 %v1539_v24  ;;  %1246 = vmatprep.mubr.msk.f32.mxu0 %vm1489_vm1, %v1490_v26 }
 0x59d   :  { %1329 = vmatprep.subr.bf16.mxu0 %v1488_v23 }
 0x5a0   :  { %1331 = vmatpush3.bf16.msra.mxu0 %v1547_v27 }
 0x5a1   :  { %1338 = vmatprep.subr.bf16.mxu0 %v1488_v23 }
 0x66e   :  { %v335_v52 = vpop.f32.mrb[2].mxu0 }
 0x66f   :  { %v340_v53 = vrot.slane %v335_v52, 4  ;;  %v1226_v54 = vpop.f32.mrb[3].mxu0 }
 0x671   :  { %v342_v55 = vadd.f32 %v340_v53, %v1532_v9 }
 0x673   :  { %1387 = vtanh.f32 %v342_v55  ;;  %v1128_v57 = vmul.f32 -1.442695, %v342_v55 }
 0x675   :  { %1389 = vpow2.f32 %v1128_v57 }
 0x67d   :  { %v1388_v56 = vpop.eup %1387 }
 0x67e   :  { %355 = vrot.lane.b32.xlu0 %v1388_v56, %s1486_s1 }
 0x67f   :  { %v1390_v58 = vpop.eup %1389 }
 0x680   :  { %v346_v59 = vadd.f32 1.0, %v1390_v58 }
 0x682   :  { %1391 = vrcp.f32 %v346_v59 }
 0x68c   :  { %v1392_v60 = vpop.eup %1391 }
 0x68d   :  { %v353_v0 = vmul.f32 %v1392_v60, %v351_v63 }
 0x6f0   :  { %v356_v61 = vpop.permute.xlu0 %355 }
 0x6f1   :  { %v358_v62 = vmul.f32 %v1392_v60, %v356_v61 }
 0x6f3   :  { %360 = vrot.lane.b32.xlu1 %v358_v62, %s1487_s0 }
 0x765   :  { %v361_v1 = vpop.permute.xlu1 %360 }
 0x766   :  { %v363_v2 = vadd.f32 %v361_v1, %v353_v0 }
 0x768   :  { %1393 = vtanh.f32 %v363_v2  ;;  %v464_v21 = vrot.slane %v363_v2, 6 }
 0x772   :  { %v1394_v3 = vpop.eup %1393 }
 0x773   :  { %366 = vrot.lane.b32.xlu0 %v1394_v3, %s1486_s1 }
 0x7e5   :  { %v367_v4 = vpop.permute.xlu0 %366 }
 0x7e6   :  { %v1588_v5 = vmul.f32 %v1392_v60, %v367_v4 }
 0x7e8   :  { %v377_v6 = vrot.slane %v1588_v5, 4 }
 0x7ea   :  { %378 = vrot.lane.b32.xlu1 %v377_v6, %s1487_s0 }
 0x85c   :  { %v379_v8 = vpop.permute.xlu1 %378 }
 0x85d   :  { %1236 = vmatmul.mubr.msk.f32.vlgmr.msra.gmra.mrb[2].mxu1 %vm153_vm3, %v379_v8 }
 0x85e   :  { %1334 = vmatpush3.bf16.msra.mxu1 %v1539_v24  ;;  %1257 = vmatprep.mubr.msk.f32.mxu1 %vm1489_vm1, %v1490_v26 }
 0x85f   :  { %1335 = vmatprep.subr.bf16.mxu1 %v1488_v23 }
 0x862   :  { %1337 = vmatpush3.bf16.msra.mxu1 %v1547_v27 }
 0x863   :  { %1344 = vmatprep.subr.bf16.mxu1 %v1488_v23 }
 0x930   :  { %v448_v10 = vpop.f32.mrb[2].mxu1 }
 0x931   :  { %v453_v11 = vrot.slane %v448_v10, 2  ;;  %v1237_v12 = vpop.f32.mrb[3].mxu1 }
 0x933   :  { %v455_v13 = vadd.f32 %v453_v11, %v1532_v9 }
 0x935   :  { %1395 = vtanh.f32 %v455_v13  ;;  %v1131_v15 = vmul.f32 -1.442695, %v455_v13 }
 0x937   :  { %1397 = vpow2.f32 %v1131_v15 }
 0x93f   :  { %v1396_v14 = vpop.eup %1395 }
 0x940   :  { %468 = vrot.lane.b32.xlu0 %v1396_v14, %s1486_s1 }
 0x941   :  { %v1398_v16 = vpop.eup %1397 }
 0x942   :  { %v459_v17 = vadd.f32 1.0, %v1398_v16 }
 0x944   :  { %1399 = vrcp.f32 %v459_v17 }
 0x94e   :  { %v1400_v18 = vpop.eup %1399 }
 0x94f   :  { %v466_v22 = vmul.f32 %v1400_v18, %v464_v21 }
 0x9b2   :  { %v469_v19 = vpop.permute.xlu0 %468 }
 0x9b3   :  { %v471_v20 = vmul.f32 %v1400_v18, %v469_v19 }
 0x9b5   :  { %473 = vrot.lane.b32.xlu1 %v471_v20, %s1487_s0 }
 0xa27   :  { %v474_v25 = vpop.permute.xlu1 %473 }
 0xa28   :  { %v476_v28 = vadd.f32 %v474_v25, %v466_v22 }
 0xa2a   :  { %1401 = vtanh.f32 %v476_v28  ;;  %v574_v43 = vrot.slane %v476_v28, 6 }
 0xa34   :  { %v1402_v9 = vpop.eup %1401 }
 0xa35   :  { %479 = vrot.lane.b32.xlu0 %v1402_v9, %s1486_s1 }
 0xaa7   :  { %v480_v29 = vpop.permute.xlu0 %479 }
 0xaa8   :  { %v1603_v30 = vmul.f32 %v1400_v18, %v480_v29 }
 0xaaa   :  { %v490_v31 = vrot.slane %v1603_v30, 6 }
 0xaac   :  { %491 = vrot.lane.b32.xlu1 %v490_v31, %s1487_s0 }
 0xb1e   :  { %v492_v32 = vpop.permute.xlu1 %491 }
 0xb1f   :  { %1247 = vmatmul.mubr.msk.f32.vlgmr.msra.gmra.mrb[4].mxu0 %vm153_vm3, %v492_v32 }
 0xb20   :  { %1340 = vmatpush3.bf16.msra.mxu0 %v1539_v24  ;;  %1268 = vmatprep.mubr.msk.f32.mxu0 %vm1489_vm1, %v1490_v26 }
 0xb21   :  { %1341 = vmatprep.subr.bf16.mxu0 %v1488_v23 }
 0xb24   :  { %1343 = vmatpush3.bf16.msra.mxu0 %v1547_v27 }
 0xb25   :  { %1350 = vmatprep.subr.bf16.mxu0 %v1488_v23 }
 0xbf2   :  { %v561_v33 = vpop.f32.mrb[4].mxu0 }
 0xbf3   :  { %v565_v34 = vadd.f32 %v561_v33, %v1530_v7  ;;  %v1248_v35 = vpop.f32.mrb[5].mxu0 }
 0xbf5   :  { %1403 = vtanh.f32 %v565_v34  ;;  %v1134_v37 = vmul.f32 -1.442695, %v565_v34 }
 0xbf7   :  { %1405 = vpow2.f32 %v1134_v37 }
 0xbff   :  { %v1404_v36 = vpop.eup %1403 }
 0xc00   :  { %578 = vrot.lane.b32.xlu0 %v1404_v36, %s1486_s1 }
 0xc01   :  { %v1406_v38 = vpop.eup %1405 }
 0xc02   :  { %v569_v39 = vadd.f32 1.0, %v1406_v38 }
 0xc04   :  { %1407 = vrcp.f32 %v569_v39 }
 0xc0e   :  { %v1408_v40 = vpop.eup %1407 }
 0xc0f   :  { %v576_v44 = vmul.f32 %v1408_v40, %v574_v43 }
 0xc72   :  { %v579_v41 = vpop.permute.xlu0 %578 }
 0xc73   :  { %v581_v42 = vmul.f32 %v1408_v40, %v579_v41 }
 0xc75   :  { %583 = vrot.lane.b32.xlu1 %v581_v42, %s1487_s0 }
 0xce7   :  { %v584_v45 = vpop.permute.xlu1 %583 }
 0xce8   :  { %v586_v46 = vadd.f32 %v584_v45, %v576_v44 }
 0xcea   :  { %1409 = vtanh.f32 %v586_v46 }
 0xcf4   :  { %v1410_v47 = vpop.eup %1409 }
 0xcf5   :  { %589 = vrot.lane.b32.xlu0 %v1410_v47, %s1486_s1  ;;  %v932_v47 = vld [vmem:[#allocation2 + $0x38] sm:$0xff] }
 0xd67   :  { %v590_v48 = vpop.permute.xlu0 %589 }
 0xd68   :  { %v592_v50 = vmul.f32 %v1408_v40, %v590_v48  ;;  %v933_v48 = vld [vmem:[#allocation2 + $0x40] sm:$0xff] }
 0xd6a   :  { %594 = vrot.lane.b32.xlu1 %v592_v50, %s1487_s0  ;;  %v934_v50 = vld [vmem:[#allocation2 + $0x48] sm:$0xff] }
 0xddc   :  { %v595_v51 = vpop.permute.xlu1 %594 }
 0xddd   :  { %1135 = vst.msk [vmem:[%s1705_s3 + $0x8] sm:$0x3] %vm151_vm2, %v595_v51  ;;  %1258 = vmatmul.mubr.msk.f32.vlgmr.msra.gmra.mrb[4].mxu1 %vm153_vm3, %v595_v51  ;;  %v1351_v51 = vpack.c.bf16 %v933_v48, %v932_v47 }
 0xdde   :  { %1346 = vmatpush3.bf16.msra.mxu1 %v1539_v24  ;;  %1279 = vmatprep.mubr.msk.f32.mxu1 %vm1489_vm1, %v1490_v26 }
 0xddf   :  { %1347 = vmatprep.subr.bf16.mxu1 %v1488_v23 }
 0xde2   :  { %1349 = vmatpush3.bf16.msra.mxu1 %v1547_v27  ;;  %v683_v27 = vrot.slane %v586_v46, 6 }
 0xde3   :  { %1356 = vmatprep.subr.bf16.mxu1 %v1488_v23 }
 0xeb0   :  { %v667_v52 = vpop.f32.mrb[4].mxu1 }
 0xeb1   :  { %v672_v53 = vrot.slane %v667_v52, 6  ;;  %v1259_v54 = vpop.f32.mrb[5].mxu1  ;;  %v935_v52 = vld [vmem:[#allocation2 + $0x50] sm:$0xff] }
 0xeb3   :  { %v674_v55 = vadd.f32 %v672_v53, %v1530_v7  ;;  %v1354_v53 = vpack.c.bf16 %v935_v52, %v934_v50 }
 0xeb5   :  { %1411 = vtanh.f32 %v674_v55  ;;  %v1137_v57 = vmul.f32 -1.442695, %v674_v55 }
 0xeb7   :  { %1413 = vpow2.f32 %v1137_v57 }
 0xebf   :  { %v1412_v56 = vpop.eup %1411 }
 0xec0   :  { %687 = vrot.lane.b32.xlu0 %v1412_v56, %s1486_s1 }
 0xec1   :  { %v1414_v24 = vpop.eup %1413 }
 0xec2   :  { %v678_v58 = vadd.f32 1.0, %v1414_v24  ;;  %v937_v24 = vld [vmem:[#allocation2 + $0x60] sm:$0xff] }
 0xec4   :  { %1415 = vrcp.f32 %v678_v58  ;;  %v938_v58 = vld [vmem:[#allocation2 + $0x68] sm:$0xff] }
 0xece   :  { %v1416_v59 = vpop.eup %1415 }
 0xecf   :  { %v685_v62 = vmul.f32 %v1416_v59, %v683_v27  ;;  %v939_v27 = vld [vmem:[#allocation2 + $0x70] sm:$0xff] }
 0xf32   :  { %v688_v60 = vpop.permute.xlu0 %687 }
 0xf33   :  { %v690_v61 = vmul.f32 %v1416_v59, %v688_v60 }
 0xf35   :  { %692 = vrot.lane.b32.xlu1 %v690_v61, %s1487_s0 }
 0xfa7   :  { %v693_v63 = vpop.permute.xlu1 %692 }
 0xfa8   :  { %v695_v0 = vadd.f32 %v693_v63, %v685_v62  ;;  %v940_v62 = vld [vmem:[#allocation2 + $0x78] sm:$0xff] }
 0xfa9   :  { %v1360_v63 = vpack.c.bf16 %v940_v62, %v939_v27 }
 0xfaa   :  { %1417 = vtanh.f32 %v695_v0  ;;  %v795_v20 = vrot.slane %v695_v0, 6  ;;  %v1145_v0 = vld [vmem:[#allocation2 + $0x58] ss:$0 sm:$0xff] }
 0xfb4   :  { %v1418_v1 = vpop.eup %1417 }
 0xfb5   :  { %698 = vrot.lane.b32.xlu0 %v1418_v1, %s1486_s1 }
0x1027   :  { %v699_v2 = vpop.permute.xlu0 %698 }
0x1028   :  { %v1634_v3 = vmul.f32 %v1416_v59, %v699_v2 }
0x102a   :  { %v708_v4 = vrot.slane %v1634_v3, 2 }
0x102c   :  { %709 = vrot.lane.b32.xlu1 %v708_v4, %s1487_s0 }
0x109e   :  { %v710_v6 = vpop.permute.xlu1 %709 }
0x109f   :  { %1269 = vmatmul.mubr.msk.f32.vlgmr.msra.gmra.mrb[6].mxu0 %vm153_vm3, %v710_v6  ;;  %v1147_v6 = vld [vmem:[#allocation2 + $0x80] ss:$0 sm:$0xff] }
0x10a0   :  { %1290 = vmatprep.mubr.msk.f32.mxu0 %vm1489_vm1, %v1490_v26  ;;  %1352 = vmatpush3.bf16.msra.mxu0 %v1351_v51 }
0x10a1   :  { %1353 = vmatprep.subr.bf16.mxu0 %v1488_v23 }
0x10a4   :  { %1355 = vmatpush3.bf16.msra.mxu0 %v1354_v53 }
0x1172   :  { %v779_v8 = vpop.f32.mrb[6].mxu0 }
0x1173   :  { %v784_v10 = vrot.slane %v779_v8, 4  ;;  %v1270_v11 = vpop.f32.mrb[7].mxu0 }
0x1175   :  { %v786_v12 = vadd.f32 %v784_v10, %v1530_v7 }
0x1177   :  { %1419 = vtanh.f32 %v786_v12  ;;  %v1140_v14 = vmul.f32 -1.442695, %v786_v12 }
0x1179   :  { %1421 = vpow2.f32 %v1140_v14 }
0x1181   :  { %v1420_v13 = vpop.eup %1419 }
0x1182   :  { %799 = vrot.lane.b32.xlu0 %v1420_v13, %s1486_s1 }
0x1183   :  { %v1422_v15 = vpop.eup %1421 }
0x1184   :  { %v790_v16 = vadd.f32 1.0, %v1422_v15 }
0x1186   :  { %1423 = vrcp.f32 %v790_v16 }
0x1190   :  { %v1424_v17 = vpop.eup %1423 }
0x1191   :  { %v797_v21 = vmul.f32 %v1424_v17, %v795_v20 }
0x11f4   :  { %v800_v18 = vpop.permute.xlu0 %799 }
0x11f5   :  { %v802_v19 = vmul.f32 %v1424_v17, %v800_v18 }
0x11f7   :  { %804 = vrot.lane.b32.xlu1 %v802_v19, %s1487_s0 }
0x1269   :  { %v805_v22 = vpop.permute.xlu1 %804 }
0x126a   :  { %v807_v25 = vadd.f32 %v805_v22, %v797_v21 }
0x126c   :  { %1425 = vtanh.f32 %v807_v25 }
0x1276   :  { %v1426_v28 = vpop.eup %1425 }
0x1277   :  { %810 = vrot.lane.b32.xlu0 %v1426_v28, %s1486_s1 }
0x12e9   :  { %v811_v9 = vpop.permute.xlu0 %810 }
0x12ea   :  { %v813_v29 = vmul.f32 %v1424_v17, %v811_v9 }
0x12ec   :  { %v820_v31 = vrot.slane %v813_v29, 4 }
0x12ee   :  { %821 = vrot.lane.b32.xlu1 %v820_v31, %s1487_s0 }
0x1360   :  { %v822_v32 = vpop.permute.xlu1 %821 }
0x1361   :  { %1280 = vmatmul.mubr.msk.f32.vlgmr.msra.gmra.mrb[6].mxu1 %vm153_vm3, %v822_v32 }
0x1362   :  { %1301 = vmatprep.mubr.msk.f32.mxu1 %vm1489_vm1, %v1490_v26  ;;  %v907_v26 = vrot.slane %v807_v25, 6 }
0x1434   :  { %v891_v33 = vpop.f32.mrb[6].mxu1 }
0x1435   :  { %v896_v34 = vrot.slane %v891_v33, 2  ;;  %v1281_v35 = vpop.f32.mrb[7].mxu1 }
0x1437   :  { %v898_v36 = vadd.f32 %v896_v34, %v1530_v7 }
0x1439   :  { %1427 = vtanh.f32 %v898_v36  ;;  %v1143_v38 = vmul.f32 -1.442695, %v898_v36 }
0x143b   :  { %1429 = vpow2.f32 %v1143_v38 }
0x1443   :  { %v1428_v37 = vpop.eup %1427 }
0x1444   :  { %911 = vrot.lane.b32.xlu0 %v1428_v37, %s1486_s1 }
0x1445   :  { %v1430_v39 = vpop.eup %1429 }
0x1446   :  { %v902_v40 = vadd.f32 1.0, %v1430_v39 }
0x1448   :  { %1431 = vrcp.f32 %v902_v40 }
0x1452   :  { %v1432_v41 = vpop.eup %1431 }
0x1453   :  { %v909_v44 = vmul.f32 %v1432_v41, %v907_v26 }
0x14b6   :  { %v912_v42 = vpop.permute.xlu0 %911 }
0x14b7   :  { %v914_v43 = vmul.f32 %v1432_v41, %v912_v42 }
0x14b9   :  { %916 = vrot.lane.b32.xlu1 %v914_v43, %s1487_s0 }
0x152b   :  { %v917_v45 = vpop.permute.xlu1 %916 }
0x152c   :  { %v919_v46 = vadd.f32 %v917_v45, %v909_v44 }
0x152e   :  { %1433 = vtanh.f32 %v919_v46 }
0x1538   :  { %v1434_v7 = vpop.eup %1433 }
0x1539   :  { %922 = vrot.lane.b32.xlu0 %v1434_v7, %s1486_s1 }
0x153d   :  { %258 = vrot.lane.b32.xlu0 %v1573_v49, %s1487_s0  ;;  %v1357_v49 = vpack.c.bf16 %v938_v58, %v937_v24 }
0x153f   :  { %1358 = vmatpush3.bf16.msra.mxu1 %v1357_v49 }
0x1540   :  { %1359 = vmatprep.subr.bf16.mxu1 %v1488_v23 }
0x1541   :  { %484 = vrot.lane.b32.xlu0 %v1603_v30, %s1487_s0 }
0x1543   :  { %1361 = vmatpush3.bf16.msra.mxu1 %v1360_v63 }
0x1545   :  { %815 = vrot.lane.b32.xlu0 %v813_v29, %s1487_s0 }
0x15ab   :  { %v923_v54 = vpop.permute.xlu0 %922 }
0x15ac   :  { %v925_v55 = vmul.f32 %v1432_v41, %v923_v54 }
0x15ae   :  { %v946_v56 = vrot.slane %v925_v55, 6 }
0x15af   :  { %v259_v57 = vpop.permute.xlu0 %258 }
0x15b0   :  { %1126 = vst.msk [vmem:[%s1705_s3] sm:$0xc] %vm262_vm4, %v259_v57  ;;  %947 = vrot.lane.b32.xlu1 %v946_v56, %s1487_s0 }
0x15b3   :  { %v485_v30 = vpop.permute.xlu0 %484 }
0x15b4   :  { %1132 = vst.msk [vmem:[%s1705_s3] sm:$0xc0] %vm488_vm5, %v485_v30  ;;  %371 = vrot.lane.b32.xlu1 %v1588_v5, %s1487_s0 }
0x15b7   :  { %v816_v59 = vpop.permute.xlu0 %815 }
0x15b8   :  { %1141 = vst.msk [vmem:[%s1705_s3 + $0x8] sm:$0x30] %vm375_vm6, %v816_v59  ;;  %703 = vrot.lane.b32.xlu1 %v1634_v3, %s1487_s0 }
0x15bc   :  { %927 = vrot.lane.b32.xlu1 %v925_v55, %s1487_s0 }
0x1622   :  { %v948_v23 = vpop.permute.xlu1 %947 }
0x1623   :  { %1291 = vmatmul.mubr.msk.f32.vlgmr.msra.gmra.mrb[8].mxu0 %vm153_vm3, %v948_v23 }
0x1626   :  { %v372_v60 = vpop.permute.xlu1 %371 }
0x1627   :  { %1129 = vst.msk [vmem:[%s1705_s3] sm:$0x30] %vm375_vm6, %v372_v60 }
0x162a   :  { %v704_v5 = vpop.permute.xlu1 %703 }
0x162b   :  { %1138 = vst.msk [vmem:[%s1705_s3 + $0x8] sm:$0xc] %vm262_vm4, %v704_v5 }
0x162e   :  { %v928_v61 = vpop.permute.xlu1 %927 }
0x162f   :  { %1144 = vst.msk [vmem:[%s1705_s3 + $0x8] sm:$0xc0] %vm488_vm5, %v928_v61  ;;  %s1457_s3 = scalar_lea.vmem %s1108_s20, 32 }
0x1630   :  { %p1458_p8 = scmp.ne.s32.totalorder %s1108_s20, %s1457_s3  ;;  %p1463_p10 = scmp.lt.s32.totalorder %s1457_s3, %s1457_s3 }
0x1632   :  { %p1464_p11 = por %p1463_p10, %p1462_p9 }
0x1634   :  { %p1465_p12 = pnand %p1464_p11, %p1458_p8 }
0x16f6   :  { %v1017_v1 = vpop.f32.mrb[8].mxu0 }
0x16f7   :  { %v1018_v2 = vadd.f32 %v1145_v0, %v1017_v1  ;;  %v1292_v3 = vpop.f32.mrb[9].mxu0 }
0x16f9   :  { %v1021_v4 = vmax.f32 %v1018_v2, 0.0 }
0x16fb   :  { %1302 = vmatmul.mubr.msk.f32.vlgmr.msra.gmra.mrb[8].mxu1 %vm153_vm3, %v1021_v4 }
0x17ce   :  { %v1095_v8 = vpop.f32.mrb[8].mxu1 }
0x17cf   :  { %v1096_v10 = vadd.f32 %v1147_v6, %v1095_v8  ;;  %v1303_v11 = vpop.f32.mrb[9].mxu1 }
0x17d1   :  { %1100 = vst.msk [vmem:[#allocation5] sm:$0x3] %vm1099_vm7, %v1096_v10 }
0x17d2   :  { %1468 = shalt.err (!%p1465_p12)
}
0x17d3   :  { %s1469_s23 = scalar_lea.hbm %s1704_s2, 32 }
0x17d4   :  { %p1470_p13 = scmp.ne.s32.totalorder %s1704_s2, %s1469_s23  ;;  %p1473_p0 = scmp.lt.u32.totalorder %s1469_s23, %s1704_s2 }
0x17d6   :  { %p1475_p1 = pnand %p1473_p0, %p1470_p13 }
0x17d8   :  { %1478 = shalt.err (!%p1475_p1)
}
0x17d9   :  { %1110 = dma.vmem_to_hbm [thread:$0]  %s1108_s20, 32, %s1704_s2, [#allocation4]  }
0x17da   :  { %1481 = dma.done.wait [#allocation4], 32  }
0x17db   :  { %1482 = vsyncadd [#allocation4], 4294967264 }
0x17dc   :  { %1118 = vsyncpa [#allocation3], 1 }
0x17dd   :  { %1119 = vsyncpa [#allocation4], 1 }

</bundles_post_ra>
